<compile_context>
chip_gen: v6e
topology: v6e:2x2x1
jax: 0.10.0
libtpu: 0.0.40
codegen_flags: <defaults>
</compile_context>

<pallas_src>
import math
import jax
import jax.numpy as jnp
from jax.experimental import pallas as pl
from jax.experimental.pallas import tpu as pltpu


# ----------------------------- Fused Pallas kernel -----------------------------

def _encoder_zd_kernel(
    x_ref,                                   # (1, enc_in, seq_len)   x_enc.permute(0,2,1)
    ew1_ref, eb1_ref, ew2_ref, eb2_ref,      # enc_embedding MLP: seq_len -> hidden -> dyn
    zwT_ref, zbT_ref,                        # zd_net transposed: (zd_dim, enc_in), (zd_dim, 1)
    rw1_ref, rb1_ref, rw2_ref, rb2_ref,      # fused rec mean|std heads: dyn -> 2*hid -> 2*seq_len
    pw1_ref, pb1_ref, pw2_ref, pb2_ref,      # fused pred mean|std heads: seq_len -> 2*hid -> 2*pred_len
    eps_rec_ref, eps_pred_ref,               # (1, zd_dim, seq_len), (1, zd_dim, pred_len)
    o_rec_ms_ref, o_rec_z_ref,               # (1, zd_dim, 2*seq_len), (1, zd_dim, seq_len)
    o_pred_ms_ref, o_pred_z_ref,             # (1, zd_dim, 2*pred_len), (1, zd_dim, pred_len)
):
    f32 = jnp.float32
    seq_len = o_rec_z_ref.shape[-1]
    pred_len = o_pred_z_ref.shape[-1]

    # ---- enc_embedding: (enc_in, seq_len) -> (enc_in, dyn) ----
    xt = x_ref[0]                                                       # (enc_in, seq_len)
    h = jnp.tanh(jnp.dot(xt, ew1_ref[...], preferred_element_type=f32) + eb1_ref[...])
    e = jnp.dot(h, ew2_ref[...], preferred_element_type=f32) + eb2_ref[...]   # (enc_in, dyn)

    # ---- zd_net with both permutes folded: zd[k, d] = sum_c Wz[c, k] * e[c, d] + bz[k] ----
    z = jnp.dot(zwT_ref[...], e, preferred_element_type=f32) + zbT_ref[...]   # (zd_dim, dyn)

    # ---- reconstruction heads (mean & std fused) ----
    hr = jnp.tanh(jnp.dot(z, rw1_ref[...], preferred_element_type=f32) + rb1_ref[...])
    ms_rec = jnp.dot(hr, rw2_ref[...], preferred_element_type=f32) + rb2_ref[...]  # (zd_dim, 2*seq_len)
    rec_mean = ms_rec[:, :seq_len]
    rec_std = ms_rec[:, seq_len:]
    z_rec = rec_mean + jnp.exp(0.5 * rec_std) * eps_rec_ref[0]

    # ---- prediction heads (mean & std fused), applied to rec_mean ----
    hp = jnp.tanh(jnp.dot(rec_mean, pw1_ref[...], preferred_element_type=f32) + pb1_ref[...])
    ms_pred = jnp.dot(hp, pw2_ref[...], preferred_element_type=f32) + pb2_ref[...]  # (zd_dim, 2*pred_len)
    pred_mean = ms_pred[:, :pred_len]
    pred_std = ms_pred[:, pred_len:]
    z_pred = pred_mean + jnp.exp(0.5 * pred_std) * eps_pred_ref[0]

    # ---- write packed [mean | std] slabs + sampled z ----
    o_rec_ms_ref[0] = ms_rec
    o_rec_z_ref[0] = z_rec
    o_pred_ms_ref[0] = ms_pred
    o_pred_z_ref[0] = z_pred


# ----------------------------- Parameter setup -----------------------------

def _init_linear(key, f_in, f_out):
    """PyTorch nn.Linear default init (deterministic). W stored as (in, out)."""
    kw, kb = jax.random.split(key)
    bound = 1.0 / math.sqrt(f_in)
    w = jax.random.uniform(kw, (f_in, f_out), jnp.float32, -bound, bound)
    b = jax.random.uniform(kb, (1, f_out), jnp.float32, -bound, bound)
    return w, b


def _init_mlp(key, f_in, hidden, f_out):
    k1, k2 = jax.random.split(key)
    w1, b1 = _init_linear(k1, f_in, hidden)
    w2, b2 = _init_linear(k2, hidden, f_out)
    return dict(w1=w1, b1=b1, w2=w2, b2=b2)


def init_encoder_zd_params(key, cfg):
    keys = jax.random.split(key, 6)
    params = {}
    params["enc_embedding"] = _init_mlp(keys[0], cfg["seq_len"], cfg["hidden_dim"], cfg["dynamic_dim"])
    zw, zb = _init_linear(keys[1], cfg["enc_in"], cfg["zd_dim"])
    params["zd_net"] = dict(w=zw, b=zb)
    params["zd_rec_net_mean"] = _init_mlp(keys[2], cfg["dynamic_dim"], cfg["hidden_dim"], cfg["seq_len"])
    params["zd_rec_net_std"] = _init_mlp(keys[3], cfg["dynamic_dim"], cfg["hidden_dim"], cfg["seq_len"])
    params["zd_pred_net_mean"] = _init_mlp(keys[4], cfg["seq_len"], cfg["hidden_dim"], cfg["pred_len"])
    params["zd_pred_net_std"] = _init_mlp(keys[5], cfg["seq_len"], cfg["hidden_dim"], cfg["pred_len"])
    return params


def _fuse_params(params):
    """Build the fused / pre-transposed operands the kernel consumes (tiny, pure JAX)."""
    emb = params["enc_embedding"]
    recm, recs = params["zd_rec_net_mean"], params["zd_rec_net_std"]
    predm, preds = params["zd_pred_net_mean"], params["zd_pred_net_std"]
    zd = params["zd_net"]

    def blockdiag(w_a, w_b):
        h, oa = w_a.shape
        _, ob = w_b.shape
        w = jnp.zeros((2 * h, oa + ob), w_a.dtype)
        w = w.at[:h, :oa].set(w_a)
        w = w.at[h:, oa:].set(w_b)
        return w

    return dict(
        ew1=emb["w1"], eb1=emb["b1"], ew2=emb["w2"], eb2=emb["b2"],
        zwT=zd["w"].T, zbT=zd["b"].reshape(-1, 1),
        rw1=jnp.concatenate([recm["w1"], recs["w1"]], axis=1),
        rb1=jnp.concatenate([recm["b1"], recs["b1"]], axis=1),
        rw2=blockdiag(recm["w2"], recs["w2"]),
        rb2=jnp.concatenate([recm["b2"], recs["b2"]], axis=1),
        pw1=jnp.concatenate([predm["w1"], preds["w1"]], axis=1),
        pb1=jnp.concatenate([predm["b1"], preds["b1"]], axis=1),
        pw2=blockdiag(predm["w2"], preds["w2"]),
        pb2=jnp.concatenate([predm["b2"], preds["b2"]], axis=1),
    )


# ----------------------------- Encoder_ZD forward -----------------------------

def encoder_zd_forward(params, x_enc, eps_key, cfg):
    B, seq_len, enc_in = x_enc.shape
    zd_dim = cfg["zd_dim"]
    dyn = cfg["dynamic_dim"]
    hid = cfg["hidden_dim"]
    pred_len = cfg["pred_len"]

    fused = _fuse_params(params)

    # Only layout op outside the kernel: the module's initial x_enc.permute(0,2,1).
    x_t = jnp.transpose(x_enc, (0, 2, 1))                     # (B, enc_in, seq_len)

    k1, k2 = jax.random.split(eps_key)
    eps_rec = jax.random.normal(k1, (B, zd_dim, seq_len), jnp.float32)
    eps_pred = jax.random.normal(k2, (B, zd_dim, pred_len), jnp.float32)

    def full2d(shape):
        return pl.BlockSpec(shape, lambda b: (0, 0))

    def batched(shape2):
        return pl.BlockSpec((1,) + shape2, lambda b: (b, 0, 0))

    # Advisory cost estimate so XLA schedules this tiny custom call sensibly.
    flops_per_b = 2 * (enc_in * seq_len * hid + enc_in * hid * dyn
                       + zd_dim * enc_in * dyn
                       + zd_dim * dyn * 2 * hid + zd_dim * 2 * hid * 2 * seq_len
                       + zd_dim * seq_len * 2 * hid + zd_dim * 2 * hid * 2 * pred_len)
    transc_per_b = enc_in * hid + 4 * zd_dim * hid + zd_dim * (seq_len + pred_len)
    param_bytes = sum(4 * int(v.size) for v in jax.tree_util.tree_leaves(fused))
    bytes_accessed = (4 * (x_t.size + eps_rec.size + eps_pred.size)
                      + param_bytes
                      + 4 * B * zd_dim * (3 * seq_len + 3 * pred_len))

    out_shapes = (
        jax.ShapeDtypeStruct((B, zd_dim, 2 * seq_len), jnp.float32),   # [rec_mean | rec_std]
        jax.ShapeDtypeStruct((B, zd_dim, seq_len), jnp.float32),       # zd_rec
        jax.ShapeDtypeStruct((B, zd_dim, 2 * pred_len), jnp.float32),  # [pred_mean | pred_std]
        jax.ShapeDtypeStruct((B, zd_dim, pred_len), jnp.float32),      # zd_pred
    )
    out_specs = (
        batched((zd_dim, 2 * seq_len)),
        batched((zd_dim, seq_len)),
        batched((zd_dim, 2 * pred_len)),
        batched((zd_dim, pred_len)),
    )
    in_specs = [
        batched((enc_in, seq_len)),
        full2d((seq_len, hid)), full2d((1, hid)),
        full2d((hid, dyn)), full2d((1, dyn)),
        full2d((zd_dim, enc_in)), full2d((zd_dim, 1)),
        full2d((dyn, 2 * hid)), full2d((1, 2 * hid)),
        full2d((2 * hid, 2 * seq_len)), full2d((1, 2 * seq_len)),
        full2d((seq_len, 2 * hid)), full2d((1, 2 * hid)),
        full2d((2 * hid, 2 * pred_len)), full2d((1, 2 * pred_len)),
        batched((zd_dim, seq_len)),
        batched((zd_dim, pred_len)),
    ]

    rec_ms, rec_z, pred_ms, pred_z = pl.pallas_call(
        _encoder_zd_kernel,
        grid=(B,),
        in_specs=in_specs,
        out_specs=out_specs,
        out_shape=out_shapes,
        compiler_params=pltpu.CompilerParams(dimension_semantics=("parallel",)),
        cost_estimate=pl.CostEstimate(
            flops=B * flops_per_b,
            transcendentals=B * transc_per_b,
            bytes_accessed=int(bytes_accessed)),
    )(x_t,
      fused["ew1"], fused["eb1"], fused["ew2"], fused["eb2"],
      fused["zwT"], fused["zbT"],
      fused["rw1"], fused["rb1"], fused["rw2"], fused["rb2"],
      fused["pw1"], fused["pb1"], fused["pw2"], fused["pb2"],
      eps_rec, eps_pred)

    zd_rec_mean = rec_ms[:, :, :seq_len]
    zd_rec_std = rec_ms[:, :, seq_len:]
    zd_pred_mean = pred_ms[:, :, :pred_len]
    zd_pred_std = pred_ms[:, :, pred_len:]
    return (zd_rec_mean, zd_rec_std, rec_z), (zd_pred_mean, zd_pred_std, pred_z)


# ----------------------------- Pure-JAX reference -----------------------------

def _ref_mlp2(x, p):
    return jnp.tanh(x @ p["w1"] + p["b1"]) @ p["w2"] + p["b2"]


def encoder_zd_reference(params, x_enc, eps_key, cfg):
    B, seq_len, enc_in = x_enc.shape
    zd_dim, pred_len = cfg["zd_dim"], cfg["pred_len"]
    zd_x_enc = _ref_mlp2(jnp.transpose(x_enc, (0, 2, 1)), params["enc_embedding"])
    zd = jnp.transpose(zd_x_enc, (0, 2, 1)) @ params["zd_net"]["w"] + params["zd_net"]["b"]
    zd = jnp.transpose(zd, (0, 2, 1))
    zd_rec_mean = _ref_mlp2(zd, params["zd_rec_net_mean"])
    zd_rec_std = _ref_mlp2(zd, params["zd_rec_net_std"])
    k1, k2 = jax.random.split(eps_key)
    eps_rec = jax.random.normal(k1, (B, zd_dim, seq_len), jnp.float32)
    zd_rec = zd_rec_mean + jnp.exp(0.5 * zd_rec_std) * eps_rec
    zd_pred_mean = _ref_mlp2(zd_rec_mean, params["zd_pred_net_mean"])
    zd_pred_std = _ref_mlp2(zd_rec_mean, params["zd_pred_net_std"])
    eps_pred = jax.random.normal(k2, (B, zd_dim, pred_len), jnp.float32)
    zd_pred = zd_pred_mean + jnp.exp(0.5 * zd_pred_std) * eps_pred
    return (zd_rec_mean, zd_rec_std, zd_rec), (zd_pred_mean, zd_pred_std, zd_pred)


# ----------------------------- Main -----------------------------

if __name__ == "__main__":
    cfg = dict(
        enc_in=4,        # number of variables (channels)
        seq_len=16,      # input sequence length
        pred_len=8,      # prediction length
        dynamic_dim=32,  # embedding dim of enc_embedding
        hidden_dim=32,   # MLP hidden dim
        zd_dim=4,        # latent dim
    )
    B = 2

    key = jax.random.PRNGKey(0)
    k_param, k_x, k_eps = jax.random.split(key, 3)

    params = init_encoder_zd_params(k_param, cfg)
    x_enc = jax.random.normal(k_x, (B, cfg["seq_len"], cfg["enc_in"]), jnp.float32)

    fwd = jax.jit(lambda p, x, k: encoder_zd_forward(p, x, k, cfg))
    out = fwd(params, x_enc, k_eps)
    out = jax.block_until_ready(out)

    # correctness check against the pure-JAX reference
    ref = encoder_zd_reference(params, x_enc, k_eps, cfg)
    for got_t, ref_t in zip(out, ref):
        for g, r in zip(got_t, ref_t):
            assert g.shape == r.shape
            assert jnp.allclose(g, r, atol=1e-5, rtol=1e-5), "mismatch vs reference"

    print("KERNEL_OK")
</pallas_src>

<mosaic_0001>
module attributes {stable_mosaic.version = 11 : i64} {
  func.func @_encoder_zd_kernel(%arg0: i32, %arg1: memref<1x4x16xf32, #tpu.memory_space<vmem>>, %arg2: memref<16x32xf32, #tpu.memory_space<vmem>>, %arg3: memref<1x32xf32, #tpu.memory_space<vmem>>, %arg4: memref<32x32xf32, #tpu.memory_space<vmem>>, %arg5: memref<1x32xf32, #tpu.memory_space<vmem>>, %arg6: memref<4x4xf32, #tpu.memory_space<vmem>>, %arg7: memref<4x1xf32, #tpu.memory_space<vmem>>, %arg8: memref<32x64xf32, #tpu.memory_space<vmem>>, %arg9: memref<1x64xf32, #tpu.memory_space<vmem>>, %arg10: memref<64x32xf32, #tpu.memory_space<vmem>>, %arg11: memref<1x32xf32, #tpu.memory_space<vmem>>, %arg12: memref<16x64xf32, #tpu.memory_space<vmem>>, %arg13: memref<1x64xf32, #tpu.memory_space<vmem>>, %arg14: memref<64x16xf32, #tpu.memory_space<vmem>>, %arg15: memref<1x16xf32, #tpu.memory_space<vmem>>, %arg16: memref<1x4x16xf32, #tpu.memory_space<vmem>>, %arg17: memref<1x4x8xf32, #tpu.memory_space<vmem>>, %arg18: memref<1x4x32xf32, #tpu.memory_space<vmem>>, %arg19: memref<1x4x16xf32, #tpu.memory_space<vmem>>, %arg20: memref<1x4x16xf32, #tpu.memory_space<vmem>>, %arg21: memref<1x4x8xf32, #tpu.memory_space<vmem>>) attributes {dimension_semantics = [#tpu.dimension_semantics<parallel>], iteration_bounds = array<i64: 2>, scalar_prefetch = 0 : i64, scratch_operands = 0 : i64, tpu.core_type = #tpu.core_type<tc>, window_params = [{transform_indices = @transform_0, window_bounds = array<i64: 1, 4, 16>}, {pipeline_mode = #tpu.pipeline_mode<synchronous>, transform_indices = @transform_1, window_bounds = array<i64: 16, 32>}, {pipeline_mode = #tpu.pipeline_mode<synchronous>, transform_indices = @transform_2, window_bounds = array<i64: 1, 32>}, {pipeline_mode = #tpu.pipeline_mode<synchronous>, transform_indices = @transform_3, window_bounds = array<i64: 32, 32>}, {pipeline_mode = #tpu.pipeline_mode<synchronous>, transform_indices = @transform_4, window_bounds = array<i64: 1, 32>}, {pipeline_mode = #tpu.pipeline_mode<synchronous>, transform_indices = @transform_5, window_bounds = array<i64: 4, 4>}, {pipeline_mode = #tpu.pipeline_mode<synchronous>, transform_indices = @transform_6, window_bounds = array<i64: 4, 1>}, {pipeline_mode = #tpu.pipeline_mode<synchronous>, transform_indices = @transform_7, window_bounds = array<i64: 32, 64>}, {pipeline_mode = #tpu.pipeline_mode<synchronous>, transform_indices = @transform_8, window_bounds = array<i64: 1, 64>}, {pipeline_mode = #tpu.pipeline_mode<synchronous>, transform_indices = @transform_9, window_bounds = array<i64: 64, 32>}, {pipeline_mode = #tpu.pipeline_mode<synchronous>, transform_indices = @transform_10, window_bounds = array<i64: 1, 32>}, {pipeline_mode = #tpu.pipeline_mode<synchronous>, transform_indices = @transform_11, window_bounds = array<i64: 16, 64>}, {pipeline_mode = #tpu.pipeline_mode<synchronous>, transform_indices = @transform_12, window_bounds = array<i64: 1, 64>}, {pipeline_mode = #tpu.pipeline_mode<synchronous>, transform_indices = @transform_13, window_bounds = array<i64: 64, 16>}, {pipeline_mode = #tpu.pipeline_mode<synchronous>, transform_indices = @transform_14, window_bounds = array<i64: 1, 16>}, {transform_indices = @transform_15, window_bounds = array<i64: 1, 4, 16>}, {transform_indices = @transform_16, window_bounds = array<i64: 1, 4, 8>}, {transform_indices = @transform_17, window_bounds = array<i64: 1, 4, 32>}, {transform_indices = @transform_18, window_bounds = array<i64: 1, 4, 16>}, {transform_indices = @transform_19, window_bounds = array<i64: 1, 4, 16>}, {transform_indices = @transform_20, window_bounds = array<i64: 1, 4, 8>}]} {
    %c0 = arith.constant 0 : index
    %c0_0 = arith.constant 0 : index
    %c0_1 = arith.constant 0 : index
    %0 = vector.load %arg1[%c0, %c0_0, %c0_1] : memref<1x4x16xf32, #tpu.memory_space<vmem>>, vector<1x4x16xf32>
    %1 = vector.shape_cast %0 : vector<1x4x16xf32> to vector<4x16xf32>
    %c0_2 = arith.constant 0 : index
    %c0_3 = arith.constant 0 : index
    %2 = vector.load %arg2[%c0_2, %c0_3] : memref<16x32xf32, #tpu.memory_space<vmem>>, vector<16x32xf32>
    %cst = arith.constant dense<0.000000e+00> : vector<4x32xf32>
    %3 = tpu.matmul %1, %2, %cst {dimension_numbers = #tpu.dot_dimension_numbers<[1], [0], [0], [1], [0, 0, 1, 1], [], []>} : vector<4x16xf32>, vector<16x32xf32>, vector<4x32xf32> -> vector<4x32xf32>
    %c0_4 = arith.constant 0 : index
    %c0_5 = arith.constant 0 : index
    %4 = vector.load %arg3[%c0_4, %c0_5] : memref<1x32xf32, #tpu.memory_space<vmem>>, vector<1x32xf32>
    %5 = vector.broadcast %4 : vector<1x32xf32> to vector<4x32xf32>
    %6 = arith.addf %3, %5 : vector<4x32xf32>
    %7 = math.tanh %6 : vector<4x32xf32>
    %c0_6 = arith.constant 0 : index
    %c0_7 = arith.constant 0 : index
    %8 = vector.load %arg4[%c0_6, %c0_7] : memref<32x32xf32, #tpu.memory_space<vmem>>, vector<32x32xf32>
    %cst_8 = arith.constant dense<0.000000e+00> : vector<4x32xf32>
    %9 = tpu.matmul %7, %8, %cst_8 {dimension_numbers = #tpu.dot_dimension_numbers<[1], [0], [0], [1], [0, 0, 1, 1], [], []>} : vector<4x32xf32>, vector<32x32xf32>, vector<4x32xf32> -> vector<4x32xf32>
    %c0_9 = arith.constant 0 : index
    %c0_10 = arith.constant 0 : index
    %10 = vector.load %arg5[%c0_9, %c0_10] : memref<1x32xf32, #tpu.memory_space<vmem>>, vector<1x32xf32>
    %11 = vector.broadcast %10 : vector<1x32xf32> to vector<4x32xf32>
    %12 = arith.addf %9, %11 : vector<4x32xf32>
    %c0_11 = arith.constant 0 : index
    %c0_12 = arith.constant 0 : index
    %13 = vector.load %arg6[%c0_11, %c0_12] : memref<4x4xf32, #tpu.memory_space<vmem>>, vector<4x4xf32>
    %cst_13 = arith.constant dense<0.000000e+00> : vector<4x32xf32>
    %14 = tpu.matmul %13, %12, %cst_13 {dimension_numbers = #tpu.dot_dimension_numbers<[1], [0], [0], [1], [0, 0, 1, 1], [], []>} : vector<4x4xf32>, vector<4x32xf32>, vector<4x32xf32> -> vector<4x32xf32>
    %c0_14 = arith.constant 0 : index
    %c0_15 = arith.constant 0 : index
    %15 = vector.load %arg7[%c0_14, %c0_15] : memref<4x1xf32, #tpu.memory_space<vmem>>, vector<4x1xf32>
    %16 = vector.broadcast %15 : vector<4x1xf32> to vector<4x32xf32>
    %17 = arith.addf %14, %16 : vector<4x32xf32>
    %c0_16 = arith.constant 0 : index
    %c0_17 = arith.constant 0 : index
    %18 = vector.load %arg8[%c0_16, %c0_17] : memref<32x64xf32, #tpu.memory_space<vmem>>, vector<32x64xf32>
    %cst_18 = arith.constant dense<0.000000e+00> : vector<4x64xf32>
    %19 = tpu.matmul %17, %18, %cst_18 {dimension_numbers = #tpu.dot_dimension_numbers<[1], [0], [0], [1], [0, 0, 1, 1], [], []>} : vector<4x32xf32>, vector<32x64xf32>, vector<4x64xf32> -> vector<4x64xf32>
    %c0_19 = arith.constant 0 : index
    %c0_20 = arith.constant 0 : index
    %20 = vector.load %arg9[%c0_19, %c0_20] : memref<1x64xf32, #tpu.memory_space<vmem>>, vector<1x64xf32>
    %21 = vector.broadcast %20 : vector<1x64xf32> to vector<4x64xf32>
    %22 = arith.addf %19, %21 : vector<4x64xf32>
    %23 = math.tanh %22 : vector<4x64xf32>
    %c0_21 = arith.constant 0 : index
    %c0_22 = arith.constant 0 : index
    %24 = vector.load %arg10[%c0_21, %c0_22] : memref<64x32xf32, #tpu.memory_space<vmem>>, vector<64x32xf32>
    %cst_23 = arith.constant dense<0.000000e+00> : vector<4x32xf32>
    %25 = tpu.matmul %23, %24, %cst_23 {dimension_numbers = #tpu.dot_dimension_numbers<[1], [0], [0], [1], [0, 0, 1, 1], [], []>} : vector<4x64xf32>, vector<64x32xf32>, vector<4x32xf32> -> vector<4x32xf32>
    %c0_24 = arith.constant 0 : index
    %c0_25 = arith.constant 0 : index
    %26 = vector.load %arg11[%c0_24, %c0_25] : memref<1x32xf32, #tpu.memory_space<vmem>>, vector<1x32xf32>
    %27 = vector.broadcast %26 : vector<1x32xf32> to vector<4x32xf32>
    %28 = arith.addf %25, %27 : vector<4x32xf32>
    %29 = vector.extract_strided_slice %28 {offsets = [0, 0], sizes = [4, 16], strides = [1, 1]} : vector<4x32xf32> to vector<4x16xf32>
    %30 = vector.extract_strided_slice %28 {offsets = [0, 16], sizes = [4, 16], strides = [1, 1]} : vector<4x32xf32> to vector<4x16xf32>
    %cst_26 = arith.constant 5.000000e-01 : f32
    %31 = vector.broadcast %cst_26 : f32 to vector<4x16xf32>
    %32 = arith.mulf %31, %30 : vector<4x16xf32>
    %33 = math.exp %32 : vector<4x16xf32>
    %c0_27 = arith.constant 0 : index
    %c0_28 = arith.constant 0 : index
    %c0_29 = arith.constant 0 : index
    %34 = vector.load %arg16[%c0_27, %c0_28, %c0_29] : memref<1x4x16xf32, #tpu.memory_space<vmem>>, vector<1x4x16xf32>
    %35 = vector.shape_cast %34 : vector<1x4x16xf32> to vector<4x16xf32>
    %36 = arith.mulf %33, %35 : vector<4x16xf32>
    %37 = arith.addf %29, %36 : vector<4x16xf32>
    %c0_30 = arith.constant 0 : index
    %c0_31 = arith.constant 0 : index
    %38 = vector.load %arg12[%c0_30, %c0_31] : memref<16x64xf32, #tpu.memory_space<vmem>>, vector<16x64xf32>
    %cst_32 = arith.constant dense<0.000000e+00> : vector<4x64xf32>
    %39 = tpu.matmul %29, %38, %cst_32 {dimension_numbers = #tpu.dot_dimension_numbers<[1], [0], [0], [1], [0, 0, 1, 1], [], []>} : vector<4x16xf32>, vector<16x64xf32>, vector<4x64xf32> -> vector<4x64xf32>
    %c0_33 = arith.constant 0 : index
    %c0_34 = arith.constant 0 : index
    %40 = vector.load %arg13[%c0_33, %c0_34] : memref<1x64xf32, #tpu.memory_space<vmem>>, vector<1x64xf32>
    %41 = vector.broadcast %40 : vector<1x64xf32> to vector<4x64xf32>
    %42 = arith.addf %39, %41 : vector<4x64xf32>
    %43 = math.tanh %42 : vector<4x64xf32>
    %c0_35 = arith.constant 0 : index
    %c0_36 = arith.constant 0 : index
    %44 = vector.load %arg14[%c0_35, %c0_36] : memref<64x16xf32, #tpu.memory_space<vmem>>, vector<64x16xf32>
    %cst_37 = arith.constant dense<0.000000e+00> : vector<4x16xf32>
    %45 = tpu.matmul %43, %44, %cst_37 {dimension_numbers = #tpu.dot_dimension_numbers<[1], [0], [0], [1], [0, 0, 1, 1], [], []>} : vector<4x64xf32>, vector<64x16xf32>, vector<4x16xf32> -> vector<4x16xf32>
    %c0_38 = arith.constant 0 : index
    %c0_39 = arith.constant 0 : index
    %46 = vector.load %arg15[%c0_38, %c0_39] : memref<1x16xf32, #tpu.memory_space<vmem>>, vector<1x16xf32>
    %47 = vector.broadcast %46 : vector<1x16xf32> to vector<4x16xf32>
    %48 = arith.addf %45, %47 : vector<4x16xf32>
    %49 = vector.extract_strided_slice %48 {offsets = [0, 0], sizes = [4, 8], strides = [1, 1]} : vector<4x16xf32> to vector<4x8xf32>
    %50 = vector.extract_strided_slice %48 {offsets = [0, 8], sizes = [4, 8], strides = [1, 1]} : vector<4x16xf32> to vector<4x8xf32>
    %cst_40 = arith.constant 5.000000e-01 : f32
    %51 = vector.broadcast %cst_40 : f32 to vector<4x8xf32>
    %52 = arith.mulf %51, %50 : vector<4x8xf32>
    %53 = math.exp %52 : vector<4x8xf32>
    %c0_41 = arith.constant 0 : index
    %c0_42 = arith.constant 0 : index
    %c0_43 = arith.constant 0 : index
    %54 = vector.load %arg17[%c0_41, %c0_42, %c0_43] : memref<1x4x8xf32, #tpu.memory_space<vmem>>, vector<1x4x8xf32>
    %55 = vector.shape_cast %54 : vector<1x4x8xf32> to vector<4x8xf32>
    %56 = arith.mulf %53, %55 : vector<4x8xf32>
    %57 = arith.addf %49, %56 : vector<4x8xf32>
    %c0_44 = arith.constant 0 : index
    %c0_45 = arith.constant 0 : index
    %c0_46 = arith.constant 0 : index
    %58 = vector.load %arg18[%c0_44, %c0_45, %c0_46] : memref<1x4x32xf32, #tpu.memory_space<vmem>>, vector<1x4x32xf32>
    %59 = vector.shape_cast %58 : vector<1x4x32xf32> to vector<4x32xf32>
    %60 = vector.shape_cast %28 : vector<4x32xf32> to vector<1x4x32xf32>
    tpu.vector_store %arg18[%c0_44, %c0_45, %c0_46], %60 {strides = array<i32>} : memref<1x4x32xf32, #tpu.memory_space<vmem>>, vector<1x4x32xf32>,
    %c0_47 = arith.constant 0 : index
    %c0_48 = arith.constant 0 : index
    %c0_49 = arith.constant 0 : index
    %61 = vector.load %arg19[%c0_47, %c0_48, %c0_49] : memref<1x4x16xf32, #tpu.memory_space<vmem>>, vector<1x4x16xf32>
    %62 = vector.shape_cast %61 : vector<1x4x16xf32> to vector<4x16xf32>
    %63 = vector.shape_cast %37 : vector<4x16xf32> to vector<1x4x16xf32>
    tpu.vector_store %arg19[%c0_47, %c0_48, %c0_49], %63 {strides = array<i32>} : memref<1x4x16xf32, #tpu.memory_space<vmem>>, vector<1x4x16xf32>,
    %c0_50 = arith.constant 0 : index
    %c0_51 = arith.constant 0 : index
    %c0_52 = arith.constant 0 : index
    %64 = vector.load %arg20[%c0_50, %c0_51, %c0_52] : memref<1x4x16xf32, #tpu.memory_space<vmem>>, vector<1x4x16xf32>
    %65 = vector.shape_cast %64 : vector<1x4x16xf32> to vector<4x16xf32>
    %66 = vector.shape_cast %48 : vector<4x16xf32> to vector<1x4x16xf32>
    tpu.vector_store %arg20[%c0_50, %c0_51, %c0_52], %66 {strides = array<i32>} : memref<1x4x16xf32, #tpu.memory_space<vmem>>, vector<1x4x16xf32>,
    %c0_53 = arith.constant 0 : index
    %c0_54 = arith.constant 0 : index
    %c0_55 = arith.constant 0 : index
    %67 = vector.load %arg21[%c0_53, %c0_54, %c0_55] : memref<1x4x8xf32, #tpu.memory_space<vmem>>, vector<1x4x8xf32>
    %68 = vector.shape_cast %67 : vector<1x4x8xf32> to vector<4x8xf32>
    %69 = vector.shape_cast %57 : vector<4x8xf32> to vector<1x4x8xf32>
    tpu.vector_store %arg21[%c0_53, %c0_54, %c0_55], %69 {strides = array<i32>} : memref<1x4x8xf32, #tpu.memory_space<vmem>>, vector<1x4x8xf32>,
    return
  }
  func.func @transform_0(%arg0: i32) -> (i32, i32, i32) {
    %c0_i32 = arith.constant 0 : i32
    %c0_i32_0 = arith.constant 0 : i32
    %c0_i32_1 = arith.constant 0 : i32
    return %arg0, %c0_i32, %c0_i32_0 : i32, i32, i32
  }
  func.func @transform_1(%arg0: i32) -> (i32, i32) {
    %c0_i32 = arith.constant 0 : i32
    %c0_i32_0 = arith.constant 0 : i32
    %c0_i32_1 = arith.constant 0 : i32
    return %c0_i32, %c0_i32_0 : i32, i32
  }
  func.func @transform_2(%arg0: i32) -> (i32, i32) {
    %c0_i32 = arith.constant 0 : i32
    %c0_i32_0 = arith.constant 0 : i32
    %c0_i32_1 = arith.constant 0 : i32
    return %c0_i32, %c0_i32_0 : i32, i32
  }
  func.func @transform_3(%arg0: i32) -> (i32, i32) {
    %c0_i32 = arith.constant 0 : i32
    %c0_i32_0 = arith.constant 0 : i32
    %c0_i32_1 = arith.constant 0 : i32
    return %c0_i32, %c0_i32_0 : i32, i32
  }
  func.func @transform_4(%arg0: i32) -> (i32, i32) {
    %c0_i32 = arith.constant 0 : i32
    %c0_i32_0 = arith.constant 0 : i32
    %c0_i32_1 = arith.constant 0 : i32
    return %c0_i32, %c0_i32_0 : i32, i32
  }
  func.func @transform_5(%arg0: i32) -> (i32, i32) {
    %c0_i32 = arith.constant 0 : i32
    %c0_i32_0 = arith.constant 0 : i32
    %c0_i32_1 = arith.constant 0 : i32
    return %c0_i32, %c0_i32_0 : i32, i32
  }
  func.func @transform_6(%arg0: i32) -> (i32, i32) {
    %c0_i32 = arith.constant 0 : i32
    %c0_i32_0 = arith.constant 0 : i32
    %c0_i32_1 = arith.constant 0 : i32
    return %c0_i32, %c0_i32_0 : i32, i32
  }
  func.func @transform_7(%arg0: i32) -> (i32, i32) {
    %c0_i32 = arith.constant 0 : i32
    %c0_i32_0 = arith.constant 0 : i32
    %c0_i32_1 = arith.constant 0 : i32
    return %c0_i32, %c0_i32_0 : i32, i32
  }
  func.func @transform_8(%arg0: i32) -> (i32, i32) {
    %c0_i32 = arith.constant 0 : i32
    %c0_i32_0 = arith.constant 0 : i32
    %c0_i32_1 = arith.constant 0 : i32
    return %c0_i32, %c0_i32_0 : i32, i32
  }
  func.func @transform_9(%arg0: i32) -> (i32, i32) {
    %c0_i32 = arith.constant 0 : i32
    %c0_i32_0 = arith.constant 0 : i32
    %c0_i32_1 = arith.constant 0 : i32
    return %c0_i32, %c0_i32_0 : i32, i32
  }
  func.func @transform_10(%arg0: i32) -> (i32, i32) {
    %c0_i32 = arith.constant 0 : i32
    %c0_i32_0 = arith.constant 0 : i32
    %c0_i32_1 = arith.constant 0 : i32
    return %c0_i32, %c0_i32_0 : i32, i32
  }
  func.func @transform_11(%arg0: i32) -> (i32, i32) {
    %c0_i32 = arith.constant 0 : i32
    %c0_i32_0 = arith.constant 0 : i32
    %c0_i32_1 = arith.constant 0 : i32
    return %c0_i32, %c0_i32_0 : i32, i32
  }
  func.func @transform_12(%arg0: i32) -> (i32, i32) {
    %c0_i32 = arith.constant 0 : i32
    %c0_i32_0 = arith.constant 0 : i32
    %c0_i32_1 = arith.constant 0 : i32
    return %c0_i32, %c0_i32_0 : i32, i32
  }
  func.func @transform_13(%arg0: i32) -> (i32, i32) {
    %c0_i32 = arith.constant 0 : i32
    %c0_i32_0 = arith.constant 0 : i32
    %c0_i32_1 = arith.constant 0 : i32
    return %c0_i32, %c0_i32_0 : i32, i32
  }
  func.func @transform_14(%arg0: i32) -> (i32, i32) {
    %c0_i32 = arith.constant 0 : i32
    %c0_i32_0 = arith.constant 0 : i32
    %c0_i32_1 = arith.constant 0 : i32
    return %c0_i32, %c0_i32_0 : i32, i32
  }
  func.func @transform_15(%arg0: i32) -> (i32, i32, i32) {
    %c0_i32 = arith.constant 0 : i32
    %c0_i32_0 = arith.constant 0 : i32
    %c0_i32_1 = arith.constant 0 : i32
    return %arg0, %c0_i32, %c0_i32_0 : i32, i32, i32
  }
  func.func @transform_16(%arg0: i32) -> (i32, i32, i32) {
    %c0_i32 = arith.constant 0 : i32
    %c0_i32_0 = arith.constant 0 : i32
    %c0_i32_1 = arith.constant 0 : i32
    return %arg0, %c0_i32, %c0_i32_0 : i32, i32, i32
  }
  func.func @transform_17(%arg0: i32) -> (i32, i32, i32) {
    %c0_i32 = arith.constant 0 : i32
    %c0_i32_0 = arith.constant 0 : i32
    %c0_i32_1 = arith.constant 0 : i32
    return %arg0, %c0_i32, %c0_i32_0 : i32, i32, i32
  }
  func.func @transform_18(%arg0: i32) -> (i32, i32, i32) {
    %c0_i32 = arith.constant 0 : i32
    %c0_i32_0 = arith.constant 0 : i32
    %c0_i32_1 = arith.constant 0 : i32
    return %arg0, %c0_i32, %c0_i32_0 : i32, i32, i32
  }
  func.func @transform_19(%arg0: i32) -> (i32, i32, i32) {
    %c0_i32 = arith.constant 0 : i32
    %c0_i32_0 = arith.constant 0 : i32
    %c0_i32_1 = arith.constant 0 : i32
    return %arg0, %c0_i32, %c0_i32_0 : i32, i32, i32
  }
  func.func @transform_20(%arg0: i32) -> (i32, i32, i32) {
    %c0_i32 = arith.constant 0 : i32
    %c0_i32_0 = arith.constant 0 : i32
    %c0_i32_1 = arith.constant 0 : i32
    return %arg0, %c0_i32, %c0_i32_0 : i32, i32, i32
  }
}

</mosaic_0001>

<bundles_post_ra>
// kernel: _lambda_.1
= control target key start
LH: loop header
LB: loop body
LE: loop exit
PB: predicated region body
PF: predicated region fallthrough
CT: control target
= control target key end

     0   :  { %s2241_s0 = inlined_call_operand.vmem [shape: f32[2,4,16], index: 0, kind: input, shape index: {}]   ;;  %s2242_s1 = inlined_call_operand.vmem [shape: f32[16,32], index: 1, kind: input, shape index: {}]   ;;  %s2243_s2 = inlined_call_operand.vmem [shape: f32[1,32], index: 2, kind: input, shape index: {}]   ;;  %s2244_s3 = inlined_call_operand.vmem [shape: f32[32,32], index: 3, kind: input, shape index: {}]   ;;  %s2245_s4 = inlined_call_operand.vmem [shape: f32[1,32], index: 4, kind: input, shape index: {}]   ;;  %s2246_s5 = inlined_call_operand.vmem [shape: f32[4,4], index: 5, kind: input, shape index: {}]   ;;  %s2247_s6 = inlined_call_operand.vmem [shape: f32[4,1], index: 6, kind: input, shape index: {}]   ;;  %s2248_s7 = inlined_call_operand.vmem [shape: f32[32,64], index: 7, kind: input, shape index: {}]   ;;  %s2249_s8 = inlined_call_operand.vmem [shape: f32[1,64], index: 8, kind: input, shape index: {}]   ;;  %s2250_s9 = inlined_call_operand.vmem [shape: f32[64,32], index: 9, kind: input, shape index: {}]   ;;  %s2251_s10 = inlined_call_operand.vmem [shape: f32[1,32], index: 10, kind: input, shape index: {}]   ;;  %s2252_s11 = inlined_call_operand.vmem [shape: f32[16,64], index: 11, kind: input, shape index: {}]   ;;  %s2253_s12 = inlined_call_operand.vmem [shape: f32[1,64], index: 12, kind: input, shape index: {}]   ;;  %s2254_s13 = inlined_call_operand.vmem [shape: f32[64,16], index: 13, kind: input, shape index: {}]   ;;  %s2255_s14 = inlined_call_operand.vmem [shape: f32[1,16], index: 14, kind: input, shape index: {}]   ;;  %s2256_s15 = inlined_call_operand.vmem [shape: f32[2,4,16], index: 15, kind: input, shape index: {}]   ;;  %s2257_s16 = inlined_call_operand.vmem [shape: f32[2,4,8], index: 16, kind: input, shape index: {}]   ;;  %s2258_s17 = inlined_call_operand.vmem [shape: f32[2,4,32], index: 17, kind: output, shape index: {0}]   ;;  %s2259_s18 = inlined_call_operand.hbm [shape: f32[2,4,16], index: 18, kind: output, shape index: {1}]   ;;  %s2260_s19 = inlined_call_operand.vmem [shape: f32[2,4,16], index: 19, kind: output, shape index: {2}]   ;;  %s2261_s20 = inlined_call_operand.hbm [shape: f32[2,4,8], index: 20, kind: output, shape index: {3}]  }
   0x1   :  { %2272 = sst [smem:[#allocation12_spill]] %s2241_s0 }
   0x2   :  { %2273 = sst [smem:[#allocation13_spill]] %s2242_s1 }
   0x3   :  { %2274 = sst [smem:[#allocation14_spill]] %s2243_s2 }
   0x4   :  { %2275 = sst [smem:[#allocation15_spill]] %s2244_s3 }
   0x5   :  { %2276 = sst [smem:[#allocation16_spill]] %s2245_s4 }
   0x6   :  { %2277 = sst [smem:[#allocation17_spill]] %s2246_s5 }
   0x7   :  { %2278 = sst [smem:[#allocation18_spill]] %s2247_s6 }
   0x8   :  { %2279 = sst [smem:[#allocation19_spill]] %s2248_s7 }
   0x9   :  { %2280 = sst [smem:[#allocation20_spill]] %s2249_s8 }
   0xa   :  { %26 = vsyncpa [#allocation3], 0 }
   0xb   :  { %28 = vsyncpa [#allocation3 + $0x1], 0 }
   0xc   :  { %29 = vsyncpa [#allocation5], 0 }
   0xd   :  { %31 = vsyncpa [#allocation5 + $0x1], 0  ;;  %s1948_s1 = smov 0   ;;  %s1950_s22 = smov 0  }
   0xe   :  { %s1952_s23 = smov 0   ;;  %s1954_s24 = smov 0  }
   0xf LB: > { %2281 = sst [smem:[#allocation8_spill]] %s1828_s23  ;;  %s1969_s2 = sadd.s32 4294967295, %s1832_s24   ;;  %s1832_s24 = sphi %s1954_s24, %s2299_s24   ;;  %s1828_s23 = sphi %s1952_s23, %s2301_s23   ;;  %s1824_s22 = sphi %s1950_s22, %s2303_s22   ;;  %s1820_s1 = sphi %s1948_s1, %s2302_s1  }
  0x10   : > { %s1534_s25 = sadd.s32 4294967294, %s1832_s24   ;;  %s1973_s3 = sadd.s32 1, %s1832_s24  }
  0x11   : > { %2282 = sst [smem:[#allocation9_spill]] %s1973_s3  ;;  %s442_s26 = sadd.s32 1, %s1828_s23 }
  0x12   : > { %s439_s27 = ssub.s32 %s1832_s24, %s1973_s3  ;;  %p452_p0 = scmp.ne.s32.totalorder %s1828_s23, %s1824_s22 }
  0x13   : > { %p440_p1 = scmp.eq.s32.totalorder %s439_s27, 0  ;;  %p453_p2 = scmp.eq.s32.totalorder %s1969_s2, 1 }
  0x14   : > { %p458_p3 = scmp.ne.s32.totalorder %s1824_s22, %s1820_s1  ;;  %p459_p4 = scmp.eq.s32.totalorder %s1534_s25, 1 }
  0x15   : > { %s1984_s28 = scalar_select %p440_p1, %s1828_s23, %s442_s26  }
  0x16   : > { %p1986_p5 = por %p453_p2, %p452_p0  ;;  %p1990_p6 = por %p459_p4, %p458_p3 }
  0x17   : > { %2283 = sst [smem:[#allocation10_spill]] %s1984_s28  ;;  %p1537_p7 = scmp.ge.s32.totalorder %s1832_s24, 1 }
  0x18   : > { %s2285_s29 = scalar_select %p1990_p6, 1, 0 }
  0x19   : > { %p592_p8 = scmp.lt.s32.totalorder %s1832_s24, 3 }
  0x1a   : > { %2286 = sst [smem:[#allocation11_spill]] %s2285_s29 }
  0x1b   : > { %p593_p9 = pnand %p1537_p7, %p592_p8 }
  0x1c   : > { %s2287_s21 = sld [smem:[#allocation13_spill]] (!%p593_p9)  ;;  %p670_p10 = scmp.lt.s32.totalorder (!%p593_p9), %s1969_s2, 1 }
  0x1d   : > { %596 = sbr.rel (%p593_p9) target bundleno = 1598 (0x63e), region = 88  ;;  %s2288_s26 = sld [smem:[#allocation12_spill]] (!%p593_p9) }
  0x1e   : > { %s2289_s3 = sld [smem:[#allocation15_spill]] (!%p593_p9) }
  0x1f   : > { %s2290_s29 = sld [smem:[#allocation14_spill]] (!%p593_p9) }
  0x20   : > { %s2291_s6 = sld [smem:[#allocation18_spill]] (!%p593_p9) }
  0x21   : > { %s2293_s5 = sld [smem:[#allocation17_spill]] (!%p593_p9) }
  0x22   : > { %v692_v0 = vld [vmem:[%s2287_s21 + $0x8] sm:$0xff]  ;;  %v1834_v1 = vmov 0.0   ;;  %v691_v2 = vld [vmem:[%s2287_s21] sm:$0xff]  ;;  %vm1835_vm0 = vmmov 0   ;;  %s671_s27 = scalar_select %p670_p10, %s1969_s2, 1  ;;  %vm700_vm1 = vcmask 130048  }
  0x23   : > { %1601 = vmatprep.subr.mxu1 %v1834_v1  ;;  %1605 = vmatprep.mubr.msk.f32.mxu1 %vm1835_vm0, %v1834_v1  ;;  %vm786_vm2 = vcmask 261120   ;;  %v1836_v14 = vmov 0   ;;  %vm871_vm3 = vcmask 1043456   ;;  %vm867_vm4 = vcmask 31744   ;;  %s2294_s7 = sld [smem:[#allocation19_spill]]  ;;  %v1037_v28 = vld [vmem:[%s2250_s9 + $0x38] sm:$0xff] }
  0x24   : > { %1602 = vmatpush3.msra.mxu1 %v692_v0  ;;  %1619 = vmatprep.subr.mxu0 %v1834_v1  ;;  %s2011_s30 = sshll.u32 %s671_s27, 2  ;;  %v778_v4 = vld [vmem:[%s2289_s3 + $0x18] sm:$0xff]  ;;  %v777_v5 = vld [vmem:[%s2289_s3 + $0x10] sm:$0xff]  ;;  %v776_v6 = vld [vmem:[%s2289_s3 + $0x8] sm:$0xff]  ;;  %s1837_s27 = smov 16   ;;  %vm1045_vm5 = vcmask 523264  }
  0x25   : > { %1603 = vmatprep.subr.mxu1 %v1834_v1  ;;  %1621 = vmatprep.mubr.msk.f32.mxu0 %vm1835_vm0, %v1834_v1  ;;  %s673_s21 = scalar_lea.vmem %s2288_s26, %s2011_s30  ;;  %v775_v7 = vld [vmem:[%s2289_s3] sm:$0xff]  ;;  %s2292_s26 = sld [smem:[#allocation16_spill]]  ;;  %v1036_v29 = vld [vmem:[%s2250_s9 + $0x30] sm:$0xff]  ;;  %v1035_v30 = vld [vmem:[%s2250_s9 + $0x28] sm:$0xff]  ;;  %vm1318_vm6 = vcmask 257024   ;;  %vm1320_vm7 = vcmask 125952  }
  0x26   : > { %1604 = vmatpush3.msra.mxu1 %v691_v2  ;;  %v690_v3 = vld [vmem:[%s673_s21] sm:$0xf]  ;;  %1731 = vset.pattern.permute.xlu0 %v1836_v14  ;;  %v1033_v32 = vld [vmem:[%s2250_s9 + $0x18] sm:$0xff]  ;;  %v1032_v33 = vld [vmem:[%s2250_s9 + $0x10] sm:$0xff]  ;;  %s677_s23 = scalar_lea.vmem %s2256_s15, %s2011_s30  ;;  %s2295_s8 = sld [smem:[#allocation20_spill]] }
  0x27   : > { %1608 = vmatprep.subr.mxu1 %v1834_v1  ;;  %1606 = vmatmul.mubr.msk.f32.vlgmr.msra.gmra.mxu1 %vm700_vm1, %v690_v3  ;;  %v1545_v8 = vld [vmem:[%s2290_s29] ss:$0 sm:$0xff]  ;;  %v1031_v34 = vld [vmem:[%s2250_s9 + $0x8] sm:$0xff]  ;;  %s681_s28 = scalar_lea.vmem %s2257_s16, %s2011_s30  ;;  %s1838_s29 = smov 8   ;;  %v1223_v54 = vld [vmem:[%s2254_s13 + $0x38] sm:$0xff] }
  0x28   : > { %1616 = vmatprep.mubr.msk.f32.mxu1 %vm1835_vm0, %v1834_v1  ;;  %1609 = vmatpush3.msra.mxu1 %v778_v4  ;;  %v861_v13 = vld [vmem:[%s2291_s6] sm:$0xf]  ;;  %v1134_v36 = vld [vmem:[%s2252_s11 + $0x8] sm:$0xff]  ;;  %s685_s6 = scalar_lea.vmem %s2258_s17, %s2011_s30  ;;  %s1839_s3 = smov 112   ;;  %v1222_v55 = vld [vmem:[%s2254_s13 + $0x30] sm:$0xff] }
  0x29   : > { %1610 = vmatprep.subr.mxu1 %v1834_v1  ;;  %864 = vperm.xlu0 %1731, %v861_v13   ;;  %v860_v18 = vld [vmem:[%s2293_s5] sm:$0xf]  ;;  %v948_v20 = vld [vmem:[%s2294_s7 + $0x18] sm:$0xff]  ;;  %v947_v21 = vld [vmem:[%s2294_s7 + $0x10] sm:$0xff] }
  0x2a   : > { %1611 = vmatpush3.msra.mxu1 %v777_v5  ;;  %v946_v22 = vld [vmem:[%s2294_s7 + $0x8] sm:$0xff]  ;;  %v945_v23 = vld [vmem:[%s2294_s7] sm:$0xff]  ;;  %v1219_v58 = vld [vmem:[%s2254_s13 + $0x18] sm:$0xff] }
  0x2b   : > { %1612 = vmatprep.subr.mxu1 %v1834_v1  ;;  %v1547_v15 = vld [vmem:[%s2292_s26] ss:$0 sm:$0xff]  ;;  %v1221_v56 = vld [vmem:[%s2254_s13 + $0x28] sm:$0xff]  ;;  %v1218_v59 = vld [vmem:[%s2254_s13 + $0x10] sm:$0xff]  ;;  %s689_s26 = scalar_lea.vmem %s2260_s19, %s2011_s30  ;;  %s1840_s30 = smov [#allocation2]  }
  0x2c   : > { %1613 = vmatpush3.msra.mxu1 %v776_v6  ;;  %v1034_v31 = vld [vmem:[%s2250_s9 + $0x20] sm:$0xff]  ;;  %v1217_v60 = vld [vmem:[%s2254_s13 + $0x8] sm:$0xff] }
  0x2d   : > { %1614 = vmatprep.subr.mxu1 %v1834_v1  ;;  %v1030_v35 = vld [vmem:[%s2250_s9] sm:$0xff] }
  0x2e   : > { %1615 = vmatpush3.msra.mxu1 %v775_v7  ;;  %v1122_v37 = vld [vmem:[%s677_s23] sm:$0xf]  ;;  %s2271_s23 = sshll.u32 %s1969_s2, 6 }
  0x2f   : > { %1635 = vmatprep.subr.mxu1 %v1834_v1  ;;  %1124 = vrot.lane.b32.xlu0 %v1122_v37, %s1837_s27  ;;  %v1551_v38 = vld [vmem:[%s2295_s8] ss:$0 sm:$0xff] }
  0x30   : > { %v1133_v43 = vld [vmem:[%s2252_s11] sm:$0xff] }
  0x31   : > { %v1307_v44 = vld [vmem:[%s681_s28] sm:$0xf]  ;;  %s2167_s28 = sand.u32 1, %s1824_s22  }
  0x32   : > { %1309 = vrot.lane.b32.xlu1 %v1307_v44, %s1838_s29  ;;  %v1553_v45 = vld [vmem:[%s2251_s10] ss:$0 sm:$0xff]  ;;  %s2270_s29 = sshll.u32 %s2167_s28, 2 }
  0x33   : > { %v1220_v57 = vld [vmem:[%s2254_s13 + $0x20] sm:$0xff]  ;;  %s656_s27 = scalar_lea.vmem [#allocation2], %s2270_s29  ;;  %s1330_s29 = scalar_lea.sflag [#allocation3], %s2167_s28 }
  0x34   : > { %v1216_v61 = vld [vmem:[%s2254_s13] sm:$0xff]  ;;  %s1355_s5 = sshll.u32 %s656_s27, 4  ;;  %s1356_s5 = int_to_ptr.vmem [resolvable:$true] %s1355_s5 }
  0x35   : > { %v1555_v2 = vld [vmem:[%s2253_s12] ss:$0 sm:$0xff]  ;;  %s1742_s21 = scalar_lea.vmem %s1356_s5, 64 }
  0x36   : > { %v1557_v6 = vld [vmem:[%s2255_s14] ss:$0 sm:$0xff]  ;;  %p1743_p11 = scmp.ne.s32.totalorder %s1356_s5, %s1742_s21 }
  0x38   : > { %p1744_p12 = pnand %p1743_p11, %p1986_p5 }
  0x3a   : > { %p1745_p13 = pneg %p1744_p12 }
  0xa4   : > { %v865_v24 = vpop.permute.xlu0 %864  ;;  %v1310_v62 = vpop.permute.xlu1 %1309 }
  0xa8   : > { %v1125_v51 = vpop.permute.xlu0 %1124 }
  0xe7   : > { %v770_v9 = vpop.f32.mrf.mxu1 }
  0xe8   : > { %v771_v10 = vadd.f32 %v1545_v8, %v770_v9 }
  0xe9   : > { %v1607_v11 = vpop.f32.mrf.mxu1 }
  0xea   : > { %1732 = vtanh.f32 %v771_v10 }
  0xf7   : > { %v1733_v12 = vpop.eup %1732 }
  0xf8   : > { %1617 = vmatmul.mubr.msk.f32.vlgmr.msra.gmra.mxu1 %vm786_vm2, %v1733_v12 }
  0xf9   : > { %1651 = vmatprep.mubr.msk.f32.mxu1 %vm1835_vm0, %v1834_v1  ;;  %1636 = vmatpush3.msra.mxu1 %v1037_v28 }
  0xfa   : > { %1637 = vmatprep.subr.mxu1 %v1834_v1 }
  0xfb   : > { %1638 = vmatpush3.msra.mxu1 %v1036_v29 }
  0xfc   : > { %1639 = vmatprep.subr.mxu1 %v1834_v1 }
  0xfd   : > { %1640 = vmatpush3.msra.mxu1 %v1035_v30 }
  0xfe   : > { %1641 = vmatprep.subr.mxu1 %v1834_v1 }
  0xff   : > { %1642 = vmatpush3.msra.mxu1 %v1034_v31 }
 0x100   : > { %1643 = vmatprep.subr.mxu1 %v1834_v1 }
 0x101   : > { %1644 = vmatpush3.msra.mxu1 %v1033_v32 }
 0x102   : > { %1645 = vmatprep.subr.mxu1 %v1834_v1 }
 0x103   : > { %1646 = vmatpush3.msra.mxu1 %v1032_v33 }
 0x104   : > { %1647 = vmatprep.subr.mxu1 %v1834_v1 }
 0x105   : > { %1648 = vmatpush3.msra.mxu1 %v1031_v34 }
 0x106   : > { %1649 = vmatprep.subr.mxu1 %v1834_v1 }
 0x107   : > { %1650 = vmatpush3.msra.mxu1 %v1030_v35 }
 0x1b8   : > { %v856_v16 = vpop.f32.mrf.mxu1 }
 0x1b9   : > { %v857_v17 = vadd.f32 %v1547_v15, %v856_v16 }
 0x1ba   : > { %v1618_v19 = vpop.f32.mrf.mxu1 }
 0x1bb   : > { %1620 = vmatpush3.msk.msra.mxu0 %vm871_vm3, %v857_v17 }
 0x1bc   : > { %1622 = vmatmul.mubr.msk.f32.vlgmr.msra.gmra.mxu0 %vm867_vm4, %v860_v18  ;;  %1624 = vmatprep.subr.mxu0 %v1834_v1 }
 0x1bd   : > { %1625 = vmatpush3.msra.mxu0 %v948_v20  ;;  %1632 = vmatprep.mubr.msk.f32.mxu0 %vm1835_vm0, %v1834_v1 }
 0x1be   : > { %1626 = vmatprep.subr.mxu0 %v1834_v1 }
 0x1bf   : > { %1627 = vmatpush3.msra.mxu0 %v947_v21 }
 0x1c0   : > { %1628 = vmatprep.subr.mxu0 %v1834_v1 }
 0x1c1   : > { %1629 = vmatpush3.msra.mxu0 %v946_v22 }
 0x1c2   : > { %1630 = vmatprep.subr.mxu0 %v1834_v1 }
 0x1c3   : > { %1631 = vmatpush3.msra.mxu0 %v945_v23 }
 0x1c4   : > { %1654 = vmatprep.subr.mxu0 %v1834_v1 }
 0x27c   : > { %v941_v25 = vpop.f32.mrf.mxu0 }
 0x27d   : > { %v942_v26 = vadd.f32 %v941_v25, %v865_v24 }
 0x27e   : > { %v1623_v27 = vpop.f32.mrf.mxu0 }
 0x27f   : > { %1633 = vmatmul.mubr.msk.f32.vlgmr.msra.gmra.mxu0 %vm786_vm2, %v942_v26 }
 0x280   : > { %1658 = vmatprep.mubr.msk.f32.mxu0 %vm1835_vm0, %v1834_v1  ;;  %1655 = vmatpush3.msra.mxu0 %v1134_v36 }
 0x281   : > { %1656 = vmatprep.subr.mxu0 %v1834_v1 }
 0x282   : > { %1657 = vmatpush3.msra.mxu0 %v1133_v43 }
 0x283   : > { %1661 = vmatprep.subr.mxu0 %v1834_v1 }
 0x33f   : > { %v1025_v39 = vpop.f32.mrf.mxu0 }
 0x340   : > { %v1026_v40 = vadd.f32 %v1551_v38, %v1025_v39 }
 0x341   : > { %v1634_v41 = vpop.f32.mrf.mxu0 }
 0x342   : > { %1734 = vtanh.f32 %v1026_v40 }
 0x34f   : > { %v1735_v42 = vpop.eup %1734 }
 0x350   : > { %1652 = vmatmul.mubr.msk.f32.vlgmr.msra.gmra.mxu1 %vm1045_vm5, %v1735_v42 }
 0x410   : > { %v1115_v46 = vpop.f32.mrf.mxu1 }
 0x411   : > { %v1116_v47 = vadd.f32 %v1553_v45, %v1115_v46 }
 0x412   : > { %v1653_v48 = vpop.f32.mrf.mxu1 }
 0x413   : > { %v1119_v49 = vmul.f32 0.5, %v1116_v47  ;;  %1319 = vst.msk [vmem:[%s685_s6] sm:$0xf] %vm1318_vm6, %v1116_v47  ;;  %1659 = vmatmul.mubr.msk.f32.vlgmr.msra.gmra.mxu0 %vm700_vm1, %v1116_v47  ;;  %s1746_s6 = sshll.u32 %s1840_s30, 4  ;;  %s1747_s6 = int_to_ptr.vmem [resolvable:$false] %s1746_s6 }
 0x414   : > { %1677 = vmatprep.mubr.msk.f32.mxu0 %vm1835_vm0, %v1834_v1  ;;  %1662 = vmatpush3.msra.mxu0 %v1223_v54  ;;  %p1749_p0 = scmp.lt.s32.totalorder %s1356_s5, %s1747_s6 }
 0x415   : > { %v1120_v50 = vmul.f32 1.442695, %v1119_v49  ;;  %1663 = vmatprep.subr.mxu0 %v1834_v1 }
 0x416   : > { %1664 = vmatpush3.msra.mxu0 %v1222_v55 }
 0x417   : > { %1736 = vpow2.f32 %v1120_v50  ;;  %1665 = vmatprep.subr.mxu0 %v1834_v1 }
 0x418   : > { %1666 = vmatpush3.msra.mxu0 %v1221_v56 }
 0x419   : > { %1667 = vmatprep.subr.mxu0 %v1834_v1 }
 0x41a   : > { %1668 = vmatpush3.msra.mxu0 %v1220_v57 }
 0x41b   : > { %1669 = vmatprep.subr.mxu0 %v1834_v1 }
 0x41c   : > { %1670 = vmatpush3.msra.mxu0 %v1219_v58 }
 0x41d   : > { %1671 = vmatprep.subr.mxu0 %v1834_v1 }
 0x41e   : > { %1672 = vmatpush3.msra.mxu0 %v1218_v59 }
 0x41f   : > { %1673 = vmatprep.subr.mxu0 %v1834_v1 }
 0x420   : > { %1674 = vmatpush3.msra.mxu0 %v1217_v60 }
 0x421   : > { %1675 = vmatprep.subr.mxu0 %v1834_v1 }
 0x422   : > { %1676 = vmatpush3.msra.mxu0 %v1216_v61 }
 0x424   : > { %v1737_v52 = vpop.eup %1736 }
 0x425   : > { %v1127_v53 = vmul.f32 %v1737_v52, %v1125_v51 }
 0x427   : > { %1129 = vrot.lane.b32.xlu1 %v1127_v53, %s1839_s3  ;;  %s1353_s3 = scalar_lea.hbm %s2259_s18, %s2271_s23 }
 0x499   : > { %v1130_v63 = vpop.permute.xlu1 %1129 }
 0x49a   : > { %v1132_v0 = vadd.f32 %v1130_v63, %v1116_v47 }
 0x49c   : > { %1321 = vst.msk [vmem:[%s656_s27] sm:$0xf] %vm1320_vm7, %v1132_v0 }
 0x4d3   : > { %v1211_v1 = vpop.f32.mrf.mxu0 }
 0x4d4   : > { %v1212_v3 = vadd.f32 %v1555_v2, %v1211_v1 }
 0x4d5   : > { %v1660_v4 = vpop.f32.mrf.mxu0 }
 0x4d6   : > { %1738 = vtanh.f32 %v1212_v3 }
 0x4e3   : > { %v1739_v5 = vpop.eup %1738 }
 0x4e4   : > { %1678 = vmatmul.mubr.msk.f32.vlgmr.msra.gmra.mxu0 %vm1045_vm5, %v1739_v5 }
 0x5a4   : > { %v1300_v7 = vpop.f32.mrf.mxu0 }
 0x5a5   : > { %v1301_v8 = vadd.f32 %v1557_v6, %v1300_v7 }
 0x5a6   : > { %v1679_v9 = vpop.f32.mrf.mxu0 }
 0x5a7   : > { %v1304_v10 = vmul.f32 0.5, %v1301_v8  ;;  %1322 = vst.msk [vmem:[%s689_s26] sm:$0xf] %vm1320_vm7, %v1301_v8  ;;  %s1748_s26 = scalar_lea.vmem %s1747_s6, 128 }
 0x5a8   : > { %p1750_p1 = scmp.lt.s32.totalorder %s1748_s26, %s1742_s21 }
 0x5a9   : > { %v1305_v11 = vmul.f32 1.442695, %v1304_v10 }
 0x5aa   : > { %p1751_p2 = por %p1750_p1, %p1749_p0 }
 0x5ab   : > { %1740 = vpow2.f32 %v1305_v11 }
 0x5ac   : > { %p1752_p3 = pnand %p1751_p2, %p1745_p13 }
 0x5ae   : > { %1755 = shalt.err (!%p1752_p3)
}
 0x5af   : > { %s1756_s7 = scalar_lea.hbm %s1353_s3, 64  ;;  %s1760_s25 = scalar_lea.hbm %s2259_s18, 128 }
 0x5b0   : > { %p1757_p4 = scmp.ne.s32.totalorder %s1353_s3, %s1756_s7  ;;  %p1761_p9 = scmp.lt.s32.totalorder %s1353_s3, %s2259_s18 }
 0x5b1   : > { %p1762_p10 = scmp.lt.s32.totalorder %s1760_s25, %s1756_s7 }
 0x5b2   : > { %p1758_p7 = pnand %p1757_p4, %p1986_p5 }
 0x5b3   : > { %p1763_p11 = por %p1762_p10, %p1761_p9 }
 0x5b4   : > { %p1759_p8 = pneg %p1758_p7 }
 0x5b6   : > { %p1764_p12 = pnand %p1763_p11, %p1759_p8 }
 0x5b8   : > { %1767 = shalt.err (!%p1764_p12)
}
 0x5b9   : > { %1680 = dma.vmem_to_hbm [thread:$0]  (%p1986_p5), %s1356_s5, 64, %s1353_s3, %s1330_s29   ;;  %v1741_v12 = vpop.eup %1740  ;;  %vm1323_vm8 = vcmask 60416  }
 0x5ba   : > { %v1312_v13 = vmul.f32 %v1741_v12, %v1310_v62  ;;  %s1841_s21 = smov 120   ;;  %s2296_s30 = sshll.u32 %s2167_s28, 2 }
 0x5bb   : > { %s669_s6 = scalar_lea.vmem [#allocation4], %s2296_s30  ;;  %s2297_s7 = sshll.u32 %s1969_s2, 6 }
 0x5bc   : > { %1314 = vrot.lane.b32.xlu0 %v1312_v13, %s1841_s21  ;;  %s1371_s26 = sshll.u32 %s669_s6, 4  ;;  %s1369_s27 = scalar_lea.hbm %s2261_s20, %s2297_s7  ;;  %s1372_s26 = int_to_ptr.vmem [resolvable:$true] %s1371_s26 }
 0x5bd   : > { %s1339_s0 = scalar_lea.sflag [#allocation5], %s2167_s28  ;;  %s1768_s29 = scalar_lea.vmem %s1372_s26, 64 }
 0x5be   : > { %p1769_p13 = scmp.ne.s32.totalorder %s1372_s26, %s1768_s29  ;;  %s1842_s3 = smov [#allocation4]  }
 0x5bf   : > { %s1772_s5 = sshll.u32 %s1842_s3, 4  ;;  %s1773_s5 = int_to_ptr.vmem [resolvable:$false] %s1772_s5 }
 0x5c0   : > { %p1770_p0 = pnand %p1769_p13, %p1986_p5  ;;  %s1774_s25 = scalar_lea.vmem %s1773_s5, 128 }
 0x5c1   : > { %p1775_p2 = scmp.lt.s32.totalorder %s1372_s26, %s1773_s5  ;;  %p1776_p3 = scmp.lt.s32.totalorder %s1774_s25, %s1768_s29 }
 0x5c2   : > { %p1771_p1 = pneg %p1770_p0 }
 0x5c3   : > { %p1777_p4 = por %p1776_p3, %p1775_p2 }
 0x5c5   : > { %p1778_p7 = pnand %p1777_p4, %p1771_p1 }
 0x62e   : > { %v1315_v14 = vpop.permute.xlu0 %1314 }
 0x62f   : > { %v1317_v15 = vadd.f32 %v1315_v14, %v1301_v8 }
 0x631   : > { %1324 = vst.msk [vmem:[%s669_s6] sm:$0xf] %vm1323_vm8, %v1317_v15 }
 0x632   : > { %1781 = shalt.err (!%p1778_p7)
}
 0x633   : > { %s1782_s2 = scalar_lea.hbm %s1369_s27, 64  ;;  %s1786_s30 = scalar_lea.hbm %s2261_s20, 128 }
 0x634   : > { %p1783_p8 = scmp.ne.s32.totalorder %s1369_s27, %s1782_s2  ;;  %p1787_p11 = scmp.lt.s32.totalorder %s1369_s27, %s2261_s20 }
 0x635   : > { %p1788_p12 = scmp.lt.s32.totalorder %s1786_s30, %s1782_s2 }
 0x636   : > { %p1784_p9 = pnand %p1783_p8, %p1986_p5 }
 0x637   : > { %p1789_p13 = por %p1788_p12, %p1787_p11 }
 0x638   : > { %p1785_p10 = pneg %p1784_p9 }
 0x63a   : > { %p1790_p0 = pnand %p1789_p13, %p1785_p10 }
 0x63c   : > { %1793 = shalt.err (!%p1790_p0)
}
 0x63d   : > { %1681 = dma.vmem_to_hbm [thread:$0]  (%p1986_p5), %s1372_s26, 64, %s1369_s27, %s1339_s0  }
 0x63e PF: > { %p1691_p1 = scmp.ge.s32.totalorder %s1832_s24, 2  ;;  %s1390_s23 = sand.u32 1, %s1820_s1  }
 0x63f   : > { %s1391_s29 = scalar_lea.sflag [#allocation3], %s1390_s23 }
 0x640   : > { %p1685_p2 = pnand %p1691_p1, %p1990_p6 }
 0x642   : > { %p1686_p3 = pneg %p1685_p2 }
 0x644   : > { %1811 = dma.done.wait (%p1686_p3), %s1391_s29, 64  }
 0x645   : > { %1813 = vsyncadd (%p1686_p3), %s1391_s29, 4294967232  ;;  %s1407_s3 = scalar_lea.sflag [#allocation5], %s1390_s23 }
 0x646   : > { %1815 = dma.done.wait (%p1686_p3), %s1407_s3, 64  }
 0x647   : > { %1817 = vsyncadd (%p1686_p3), %s1407_s3, 4294967232  ;;  %s2299_s24 = sld [smem:[#allocation9_spill]]  ;;  %s2302_s1 = smov %s1824_s22 }
 0x648   : > { %s2300_s5 = sld [smem:[#allocation8_spill]] }
 0x649   : > { %s2301_s23 = sld [smem:[#allocation10_spill]] }
 0x64d   : > { %p34_p5 = scmp.ge.s32.totalorder %s2299_s24, 4  }
 0x64e   : > { %s2303_s22 = smov %s2300_s5 }
 0x64f   :  { %36 = sbr.rel (!%p34_p5) target bundleno = 15 (0xf), region = 170 }
 0x654   :  { %1412 = vsyncpa [#allocation3], 1 }
 0x655   :  { %1414 = vsyncpa [#allocation3 + $0x1], 1 }
 0x656   :  { %1415 = vsyncpa [#allocation5], 1 }
 0x657   :  { %1417 = vsyncpa [#allocation5 + $0x1], 1 }

</bundles_post_ra>
